<compile_context>
chip_gen: v6e
topology: v6e:2x2x1
jax: 0.10.0
libtpu: 0.0.40
codegen_flags: <defaults>
</compile_context>

<pallas_src>
import functools
import operator
import random
from functools import reduce

import jax
import jax.numpy as jnp
from jax.experimental import pallas as pl
from jax.experimental.pallas import tpu as pltpu

_LANE = 128
_NEG_INF = -1e30


def _round_up(x, m):
    return ((x + m - 1) // m) * m


# ----------------------------- fused forward kernel -------------------------

def _make_fused_kernel(arch, kinds):
    """Build the fused per-instance forward kernel (closure over the static arch)."""
    arch = tuple(arch)
    kinds = tuple(kinds)
    has_adj = any(k == "adj_nor" for k in kinds)
    mlp_index = {}
    for i, k in enumerate(kinds):
        if k == "mlp":
            mlp_index[i] = len(mlp_index)
    n_mlp = len(mlp_index)

    def kernel(*refs):
        # --- ref layout (derived statically from `kinds`) ---
        it = iter(refs)
        gate_ref = next(it)            # SMEM (num_p,) pre-sigmoided gates
        s0_ref = next(it)              # (1, N, F) f32 — one batch instance
        pre_w_ref = next(it)           # (F, H)  bf16
        pre_b_ref = next(it)           # (1, H)  f32
        adj_ref = next(it) if has_adj else None   # (N, N) bf16 row-normalized adjacency
        if n_mlp > 0:
            mlp_w_ref = next(it)       # (n_mlp, H, H) bf16
            mlp_b_ref = next(it)       # (n_mlp, 1, H) f32
        cls_w_ref = next(it)           # (H, Cp) bf16 (zero-padded columns)
        cls_b_ref = next(it)           # (1, Cp) f32  (pad columns = -1e30)
        o_ref = next(it)               # (1, N, Cp) f32

        def matmul(x_f32, w_bf16):
            # bf16 operands into the MXU, f32 accumulation; epilogue stays f32.
            return jnp.dot(x_f32.astype(jnp.bfloat16), w_bf16,
                           preferred_element_type=jnp.float32)

        def apply_op(i, x):
            kind = kinds[i]
            if kind == "adj_sing":
                # Graph(identity): no-op — skip the MXU matmul entirely.
                return x
            if kind == "adj_com":
                # Graph(ones/N): equals a column mean broadcast over nodes (XLU reduce).
                return jnp.broadcast_to(jnp.mean(x, axis=0, keepdims=True), x.shape)
            if kind == "adj_nor":
                return jnp.dot(adj_ref[...], x.astype(jnp.bfloat16),
                               preferred_element_type=jnp.float32)
            # MLP op (hid -> hid, ReLU).
            # TODO(synk): training-mode dropout inside MLP ops is not implemented (eval mode).
            k = mlp_index[i]
            y = matmul(x, mlp_w_ref[k]) + mlp_b_ref[k]
            return jnp.maximum(y, 0.0)

        def gated_combine(tempP, numP, totalP):
            # sum_j sigmoid(gate[totalP - len(numP) + j]) * tempP[j]   (j in numP)
            acc = None
            for j in numP:                               # static, small -> fully unrolled
                g = gate_ref[totalP - len(numP) + j]     # scalar read from SMEM
                term = g * tempP[j]
                acc = term if acc is None else acc + term
            return acc

        x0 = s0_ref[0]                                    # (N, F) f32

        # --- replicate ModelOp_change.forward control flow (static in `arch`) ---
        tempP, numP, point, totalP = [], [], 0, 0
        tempT = []
        res = None
        for i in range(len(arch)):
            if i == 0:
                # preprocess0 (MLP, last=True -> no ReLU), dropout = identity in eval.
                res = matmul(x0, pre_w_ref[...]) + pre_b_ref[...]
                tempP.append(res); numP.append(i); totalP += 1
                res = apply_op(i, res)
                if arch[i] == 1:
                    tempP.append(res); numP.append(i); totalP += 1
                else:
                    tempT.append(res); numP = []; tempP = []
            elif arch[i - 1] == 1:
                if arch[i] == 0:
                    res = gated_combine(tempP, numP, totalP)
                    res = apply_op(i, res)
                    tempT.append(res); numP = []; tempP = []
                else:
                    res = apply_op(i, res)
                    tempP.append(res); numP.append(i - point); totalP += 1
            elif arch[i] == 1:
                res = apply_op(i, res)
                tempP.append(res); point = i; numP.append(i - point); totalP += 1
            else:
                res = reduce(operator.add, tempT)
                res = apply_op(i, res)
                tempT.append(res)

        if len(numP) > 0 or len(tempP) > 0:
            res = gated_combine(tempP, numP, totalP)
        else:
            res = reduce(operator.add, tempT)

        # --- classifier (last=True -> no ReLU) fused with log_softmax(dim=1) ---
        # Padded columns carry a -1e30 bias so exp underflows to 0: log_softmax over the
        # lane-dense padded width equals log_softmax over the real classes.
        y = matmul(res, cls_w_ref[...]) + cls_b_ref[...]
        m = jnp.max(y, axis=1, keepdims=True)
        s = y - m
        lse = jnp.log(jnp.sum(jnp.exp(s), axis=1, keepdims=True))
        o_ref[0] = s - lse

    return kernel


# ----------------------------- wrapper (one pallas_call, grid over batch) ----

@functools.partial(jax.jit, static_argnames=("kinds", "arch"))
def forward(s0, params, kinds, arch):
    """Batched ModelOp_change.forward (eval mode). s0: (B, N, F) or (N, F)."""
    squeeze = (s0.ndim == 2)
    if squeeze:
        s0 = s0[None]
    s0 = s0.astype(jnp.float32)
    B, N, F = s0.shape
    H = params["pre_w"].shape[1]
    C = params["cls_w"].shape[1]
    Cp = _round_up(C, _LANE)                      # lane-dense classifier / output width

    kinds = tuple(kinds)
    has_adj = any(k == "adj_nor" for k in kinds)
    mlp_positions = [i for i, k in enumerate(kinds) if k == "mlp"]
    n_mlp = len(mlp_positions)

    # ---- layout plumbing (traced once under jit): pack / cast / pad inputs ----
    gate_sig = jax.nn.sigmoid(params["gate"]).astype(jnp.float32)   # pre-sigmoided, SMEM
    pre_w = params["pre_w"].astype(jnp.bfloat16)
    pre_b = params["pre_b"].astype(jnp.float32)

    inputs = [gate_sig, s0, pre_w, pre_b]
    in_specs = [
        pl.BlockSpec(memory_space=pltpu.MemorySpace.SMEM),          # gate (num_p,)
        pl.BlockSpec((1, N, F), lambda b: (b, 0, 0)),               # one instance / step
        pl.BlockSpec((F, H), lambda b: (0, 0)),
        pl.BlockSpec((1, H), lambda b: (0, 0)),
    ]

    if has_adj:
        # All Graph(adj_nor) ops share one adjacency (same as the torch module),
        # so a single (N, N) copy is enough (identity / ones-N variants are analytic).
        adj_idx = next(i for i, k in enumerate(kinds) if k == "adj_nor")
        adj = params["op_params"][adj_idx][0].astype(jnp.bfloat16)
        inputs.append(adj)
        in_specs.append(pl.BlockSpec((N, N), lambda b: (0, 0)))

    if n_mlp > 0:
        # Stack all MLP-op weights / biases -> two larger DMAs instead of many tiny ones.
        mlp_w = jnp.stack([params["op_params"][i][0] for i in mlp_positions]
                          ).astype(jnp.bfloat16)
        mlp_b = jnp.stack([params["op_params"][i][1] for i in mlp_positions]
                          ).astype(jnp.float32)
        inputs.extend([mlp_w, mlp_b])
        in_specs.extend([
            pl.BlockSpec((n_mlp, H, H), lambda b: (0, 0, 0)),
            pl.BlockSpec((n_mlp, 1, H), lambda b: (0, 0, 0)),
        ])

    cls_w = jnp.pad(params["cls_w"], ((0, 0), (0, Cp - C))).astype(jnp.bfloat16)
    cls_b = jnp.pad(params["cls_b"].astype(jnp.float32), ((0, 0), (0, Cp - C)),
                    constant_values=_NEG_INF)
    inputs.extend([cls_w, cls_b])
    in_specs.extend([
        pl.BlockSpec((H, Cp), lambda b: (0, 0)),
        pl.BlockSpec((1, Cp), lambda b: (0, 0)),
    ])

    out = pl.pallas_call(
        _make_fused_kernel(arch, kinds),
        out_shape=jax.ShapeDtypeStruct((B, N, Cp), jnp.float32),
        grid=(B,),
        in_specs=in_specs,
        out_specs=pl.BlockSpec((1, N, Cp), lambda b: (b, 0, 0)),
        compiler_params=pltpu.CompilerParams(
            dimension_semantics=("parallel",)),          # megacore / 2nd TC on v7x
    )(*inputs)

    out = out[..., :C]                                    # drop lane padding
    return out[0] if squeeze else out


# ----------------------------- pure-JAX f32 reference ------------------------

def forward_reference(s0, params, kinds, arch):
    """Faithful f32 replication of the torch forward for one (N, F) instance."""
    gate = jax.nn.sigmoid(params["gate"])

    def apply_op(i, x):
        if kinds[i].startswith("adj"):
            return params["op_params"][i][0] @ x
        w, b = params["op_params"][i]
        return jnp.maximum(x @ w + b, 0.0)

    def gated(tempP, numP, totalP):
        return sum(gate[totalP - len(numP) + j] * tempP[j] for j in numP)

    tempP, numP, point, totalP = [], [], 0, 0
    tempT = []
    res = None
    for i in range(len(arch)):
        if i == 0:
            res = s0 @ params["pre_w"] + params["pre_b"]
            tempP.append(res); numP.append(i); totalP += 1
            res = apply_op(i, res)
            if arch[i] == 1:
                tempP.append(res); numP.append(i); totalP += 1
            else:
                tempT.append(res); numP = []; tempP = []
        elif arch[i - 1] == 1:
            if arch[i] == 0:
                res = gated(tempP, numP, totalP)
                res = apply_op(i, res)
                tempT.append(res); numP = []; tempP = []
            else:
                res = apply_op(i, res)
                tempP.append(res); numP.append(i - point); totalP += 1
        elif arch[i] == 1:
            res = apply_op(i, res)
            tempP.append(res); point = i; numP.append(i - point); totalP += 1
        else:
            res = reduce(operator.add, tempT)
            res = apply_op(i, res)
            tempT.append(res)
    if len(numP) > 0 or len(tempP) > 0:
        res = gated(tempP, numP, totalP)
    else:
        res = reduce(operator.add, tempT)
    y = res @ params["cls_w"] + params["cls_b"]
    return jax.nn.log_softmax(y, axis=1)


# ----------------------------- model construction ---------------------------

def build_model(arch, feat_dim, hid_dim, num_classes, num_nodes, key):
    """Deterministically initialize parameters / adjacencies mirroring __init__."""
    random.seed(0)  # mirrors `random.randint(0, 2)` op selection in __init__
    keys = jax.random.split(key, 16)

    ka = keys[0]
    a = (jax.random.uniform(ka, (num_nodes, num_nodes)) < 0.3).astype(jnp.float32)
    a = jnp.maximum(a, a.T) + jnp.eye(num_nodes, dtype=jnp.float32)     # sym + self loops
    adj_nor = a / jnp.sum(a, axis=1, keepdims=True)                     # row-normalized
    adj_com = jnp.ones((num_nodes, num_nodes), jnp.float32) / num_nodes  # "complete"
    adj_sing = jnp.eye(num_nodes, dtype=jnp.float32)                    # "single" (identity)
    adj_choices = [adj_nor, adj_com, adj_sing]
    adj_kinds = ["adj_nor", "adj_com", "adj_sing"]

    def linear_params(k, in_dim, out_dim):
        kw, kb = jax.random.split(k)
        w = 0.1 * jax.random.normal(kw, (in_dim, out_dim), jnp.float32)  # stored (in, out)
        b = 0.1 * jax.random.normal(kb, (1, out_dim), jnp.float32)
        return w, b

    kinds, op_params = [], []
    num_p, lk = 1, 1
    for element in arch:
        if element == 1:
            idx = random.randint(0, 2)
            kinds.append(adj_kinds[idx])
            op_params.append((adj_choices[idx],))
            num_p += 1
        elif element == 0:
            w, b = linear_params(keys[lk], hid_dim, hid_dim)
            lk += 1
            kinds.append("mlp")
            op_params.append((w, b))
        else:
            raise ValueError("arch element error")

    gate = 1e-5 * jax.random.normal(keys[10], (num_p,), jnp.float32)
    pre_w, pre_b = linear_params(keys[11], feat_dim, hid_dim)
    cls_w, cls_b = linear_params(keys[12], hid_dim, num_classes)

    params = dict(gate=gate, pre_w=pre_w, pre_b=pre_b,
                  cls_w=cls_w, cls_b=cls_b, op_params=tuple(op_params))
    return params, tuple(kinds)


# ----------------------------- main ------------------------------------------

if __name__ == "__main__":
    NUM_NODES, FEAT_DIM, HID_DIM, NUM_CLASSES = 16, 128, 128, 8   # lane-friendly dims
    BATCH = 8                                                     # independent instances
    ARCH = (1, 1, 0, 1)   # graph ops, gated combine, MLP op, trailing gated combine

    key = jax.random.PRNGKey(0)
    k_model, k_x = jax.random.split(key)

    params, kinds = build_model(ARCH, FEAT_DIM, HID_DIM, NUM_CLASSES, NUM_NODES, k_model)
    s0 = jax.random.normal(k_x, (BATCH, NUM_NODES, FEAT_DIM), dtype=jnp.float32)

    logits = forward(s0, params, kinds, ARCH)
    jax.block_until_ready(logits)

    assert logits.shape == (BATCH, NUM_NODES, NUM_CLASSES)
    # log_softmax sanity: rows exp-sum to 1.
    assert bool(jnp.allclose(jnp.sum(jnp.exp(logits), axis=-1), 1.0, atol=1e-3))
    # Diff-test the gated-combine / numP bookkeeping against the pure-JAX f32 reference
    # (kernel uses bf16 MXU operands, hence the loose absolute tolerance).
    ref = jax.vmap(lambda x: forward_reference(x, params, kinds, ARCH))(s0)
    assert bool(jnp.allclose(logits, ref, atol=0.1))
    print("KERNEL_OK")
</pallas_src>

<mosaic_0001>
module attributes {stable_mosaic.version = 11 : i64} {
  func.func @kernel(%arg0: i32, %arg1: memref<4xf32, #tpu.memory_space<smem>>, %arg2: memref<1x16x128xf32, #tpu.memory_space<vmem>>, %arg3: memref<128x128xbf16, #tpu.memory_space<vmem>>, %arg4: memref<1x128xf32, #tpu.memory_space<vmem>>, %arg5: memref<16x16xbf16, #tpu.memory_space<vmem>>, %arg6: memref<1x128x128xbf16, #tpu.memory_space<vmem>>, %arg7: memref<1x1x128xf32, #tpu.memory_space<vmem>>, %arg8: memref<128x128xbf16, #tpu.memory_space<vmem>>, %arg9: memref<1x128xf32, #tpu.memory_space<vmem>>, %arg10: memref<1x16x128xf32, #tpu.memory_space<vmem>>) attributes {dimension_semantics = [#tpu.dimension_semantics<parallel>], iteration_bounds = array<i64: 8>, scalar_prefetch = 0 : i64, scratch_operands = 0 : i64, tpu.core_type = #tpu.core_type<tc>, window_params = [{transform_indices = @transform_0, window_bounds = array<i64: 4>}, {transform_indices = @transform_1, window_bounds = array<i64: 1, 16, 128>}, {pipeline_mode = #tpu.pipeline_mode<synchronous>, transform_indices = @transform_2, window_bounds = array<i64: 128, 128>}, {pipeline_mode = #tpu.pipeline_mode<synchronous>, transform_indices = @transform_3, window_bounds = array<i64: 1, 128>}, {pipeline_mode = #tpu.pipeline_mode<synchronous>, transform_indices = @transform_4, window_bounds = array<i64: 16, 16>}, {pipeline_mode = #tpu.pipeline_mode<synchronous>, transform_indices = @transform_5, window_bounds = array<i64: 1, 128, 128>}, {pipeline_mode = #tpu.pipeline_mode<synchronous>, transform_indices = @transform_6, window_bounds = array<i64: 1, 1, 128>}, {pipeline_mode = #tpu.pipeline_mode<synchronous>, transform_indices = @transform_7, window_bounds = array<i64: 128, 128>}, {pipeline_mode = #tpu.pipeline_mode<synchronous>, transform_indices = @transform_8, window_bounds = array<i64: 1, 128>}, {transform_indices = @transform_9, window_bounds = array<i64: 1, 16, 128>}]} {
    %c0 = arith.constant 0 : index
    %c0_0 = arith.constant 0 : index
    %c0_1 = arith.constant 0 : index
    %0 = vector.load %arg2[%c0, %c0_0, %c0_1] : memref<1x16x128xf32, #tpu.memory_space<vmem>>, vector<1x16x128xf32>
    %1 = vector.shape_cast %0 : vector<1x16x128xf32> to vector<16x128xf32>
    %c0_2 = arith.constant 0 : index
    %c0_3 = arith.constant 0 : index
    %2 = vector.load %arg3[%c0_2, %c0_3] : memref<128x128xbf16, #tpu.memory_space<vmem>>, vector<128x128xbf16>
    %3 = arith.truncf %1 : vector<16x128xf32> to vector<16x128xbf16>
    %cst = arith.constant dense<0.000000e+00> : vector<16x128xf32>
    %4 = tpu.matmul %3, %2, %cst {dimension_numbers = #tpu.dot_dimension_numbers<[1], [0], [0], [1], [0, 0, 1, 1], [], []>} : vector<16x128xbf16>, vector<128x128xbf16>, vector<16x128xf32> -> vector<16x128xf32>
    %c0_4 = arith.constant 0 : index
    %c0_5 = arith.constant 0 : index
    %5 = vector.load %arg4[%c0_4, %c0_5] : memref<1x128xf32, #tpu.memory_space<vmem>>, vector<1x128xf32>
    %6 = vector.broadcast %5 : vector<1x128xf32> to vector<16x128xf32>
    %7 = arith.addf %4, %6 : vector<16x128xf32>
    %cst_6 = arith.constant dense<0.000000e+00> : vector<128xf32>
    %8 = vector.multi_reduction <add>, %7, %cst_6 [0] : vector<16x128xf32> to vector<128xf32>
    %9 = vector.shape_cast %8 : vector<128xf32> to vector<1x128xf32>
    %cst_7 = arith.constant 1.600000e+01 : f32
    %10 = vector.broadcast %cst_7 : f32 to vector<1x128xf32>
    %11 = arith.divf %9, %10 : vector<1x128xf32>
    %12 = vector.shape_cast %11 : vector<1x128xf32> to vector<1x128xf32>
    %13 = vector.broadcast %12 : vector<1x128xf32> to vector<16x128xf32>
    %c0_8 = arith.constant 0 : index
    %14 = memref.load %arg1[%c0_8] : memref<4xf32, #tpu.memory_space<smem>>
    %15 = vector.broadcast %14 : f32 to vector<16x128xf32>
    %16 = arith.mulf %15, %7 : vector<16x128xf32>
    %c0_9 = arith.constant 0 : index
    %17 = memref.load %arg1[%c0_9] : memref<4xf32, #tpu.memory_space<smem>>
    %18 = vector.broadcast %17 : f32 to vector<16x128xf32>
    %19 = arith.mulf %18, %7 : vector<16x128xf32>
    %20 = arith.addf %16, %19 : vector<16x128xf32>
    %c1 = arith.constant 1 : index
    %21 = memref.load %arg1[%c1] : memref<4xf32, #tpu.memory_space<smem>>
    %22 = vector.broadcast %21 : f32 to vector<16x128xf32>
    %23 = arith.mulf %22, %13 : vector<16x128xf32>
    %24 = arith.addf %20, %23 : vector<16x128xf32>
    %c0_10 = arith.constant 0 : index
    %c0_11 = arith.constant 0 : index
    %c0_12 = arith.constant 0 : index
    %25 = vector.load %arg6[%c0_10, %c0_11, %c0_12] : memref<1x128x128xbf16, #tpu.memory_space<vmem>>, vector<1x128x128xbf16>
    %26 = vector.shape_cast %25 : vector<1x128x128xbf16> to vector<128x128xbf16>
    %27 = arith.truncf %24 : vector<16x128xf32> to vector<16x128xbf16>
    %cst_13 = arith.constant dense<0.000000e+00> : vector<16x128xf32>
    %28 = tpu.matmul %27, %26, %cst_13 {dimension_numbers = #tpu.dot_dimension_numbers<[1], [0], [0], [1], [0, 0, 1, 1], [], []>} : vector<16x128xbf16>, vector<128x128xbf16>, vector<16x128xf32> -> vector<16x128xf32>
    %c0_14 = arith.constant 0 : index
    %c0_15 = arith.constant 0 : index
    %c0_16 = arith.constant 0 : index
    %29 = vector.load %arg7[%c0_14, %c0_15, %c0_16] : memref<1x1x128xf32, #tpu.memory_space<vmem>>, vector<1x1x128xf32>
    %30 = vector.shape_cast %29 : vector<1x1x128xf32> to vector<1x128xf32>
    %31 = vector.broadcast %30 : vector<1x128xf32> to vector<16x128xf32>
    %32 = arith.addf %28, %31 : vector<16x128xf32>
    %cst_17 = arith.constant 0.000000e+00 : f32
    %33 = vector.broadcast %cst_17 : f32 to vector<16x128xf32>
    %34 = arith.maximumf %32, %33 : vector<16x128xf32>
    %c0_18 = arith.constant 0 : index
    %c0_19 = arith.constant 0 : index
    %35 = vector.load %arg5[%c0_18, %c0_19] : memref<16x16xbf16, #tpu.memory_space<vmem>>, vector<16x16xbf16>
    %36 = arith.truncf %34 : vector<16x128xf32> to vector<16x128xbf16>
    %cst_20 = arith.constant dense<0.000000e+00> : vector<16x128xf32>
    %37 = tpu.matmul %35, %36, %cst_20 {dimension_numbers = #tpu.dot_dimension_numbers<[1], [0], [0], [1], [0, 0, 1, 1], [], []>} : vector<16x16xbf16>, vector<16x128xbf16>, vector<16x128xf32> -> vector<16x128xf32>
    %c3 = arith.constant 3 : index
    %38 = memref.load %arg1[%c3] : memref<4xf32, #tpu.memory_space<smem>>
    %39 = vector.broadcast %38 : f32 to vector<16x128xf32>
    %40 = arith.mulf %39, %37 : vector<16x128xf32>
    %c0_21 = arith.constant 0 : index
    %c0_22 = arith.constant 0 : index
    %41 = vector.load %arg8[%c0_21, %c0_22] : memref<128x128xbf16, #tpu.memory_space<vmem>>, vector<128x128xbf16>
    %42 = arith.truncf %40 : vector<16x128xf32> to vector<16x128xbf16>
    %cst_23 = arith.constant dense<0.000000e+00> : vector<16x128xf32>
    %43 = tpu.matmul %42, %41, %cst_23 {dimension_numbers = #tpu.dot_dimension_numbers<[1], [0], [0], [1], [0, 0, 1, 1], [], []>} : vector<16x128xbf16>, vector<128x128xbf16>, vector<16x128xf32> -> vector<16x128xf32>
    %c0_24 = arith.constant 0 : index
    %c0_25 = arith.constant 0 : index
    %44 = vector.load %arg9[%c0_24, %c0_25] : memref<1x128xf32, #tpu.memory_space<vmem>>, vector<1x128xf32>
    %45 = vector.broadcast %44 : vector<1x128xf32> to vector<16x128xf32>
    %46 = arith.addf %43, %45 : vector<16x128xf32>
    %cst_26 = arith.constant dense<0xFF800000> : vector<16xf32>
    %47 = vector.multi_reduction <maximumf>, %46, %cst_26 [1] : vector<16x128xf32> to vector<16xf32>
    %48 = vector.shape_cast %47 : vector<16xf32> to vector<16x1xf32>
    %49 = vector.broadcast %48 : vector<16x1xf32> to vector<16x128xf32>
    %50 = arith.subf %46, %49 : vector<16x128xf32>
    %51 = math.exp %50 : vector<16x128xf32>
    %cst_27 = arith.constant dense<0.000000e+00> : vector<16xf32>
    %52 = vector.multi_reduction <add>, %51, %cst_27 [1] : vector<16x128xf32> to vector<16xf32>
    %53 = vector.shape_cast %52 : vector<16xf32> to vector<16x1xf32>
    %54 = math.log %53 : vector<16x1xf32>
    %55 = vector.broadcast %54 : vector<16x1xf32> to vector<16x128xf32>
    %56 = arith.subf %50, %55 : vector<16x128xf32>
    %c0_28 = arith.constant 0 : index
    %c0_29 = arith.constant 0 : index
    %c0_30 = arith.constant 0 : index
    %57 = vector.load %arg10[%c0_28, %c0_29, %c0_30] : memref<1x16x128xf32, #tpu.memory_space<vmem>>, vector<1x16x128xf32>
    %58 = vector.shape_cast %57 : vector<1x16x128xf32> to vector<16x128xf32>
    %59 = vector.shape_cast %56 : vector<16x128xf32> to vector<1x16x128xf32>
    tpu.vector_store %arg10[%c0_28, %c0_29, %c0_30], %59 {strides = array<i32>} : memref<1x16x128xf32, #tpu.memory_space<vmem>>, vector<1x16x128xf32>,
    return
  }
  func.func @transform_0(%arg0: i32) -> i32 {
    %c0_i32 = arith.constant 0 : i32
    %c0_i32_0 = arith.constant 0 : i32
    return %c0_i32 : i32
  }
  func.func @transform_1(%arg0: i32) -> (i32, i32, i32) {
    %c0_i32 = arith.constant 0 : i32
    %c0_i32_0 = arith.constant 0 : i32
    %c0_i32_1 = arith.constant 0 : i32
    return %arg0, %c0_i32, %c0_i32_0 : i32, i32, i32
  }
  func.func @transform_2(%arg0: i32) -> (i32, i32) {
    %c0_i32 = arith.constant 0 : i32
    %c0_i32_0 = arith.constant 0 : i32
    %c0_i32_1 = arith.constant 0 : i32
    return %c0_i32, %c0_i32_0 : i32, i32
  }
  func.func @transform_3(%arg0: i32) -> (i32, i32) {
    %c0_i32 = arith.constant 0 : i32
    %c0_i32_0 = arith.constant 0 : i32
    %c0_i32_1 = arith.constant 0 : i32
    return %c0_i32, %c0_i32_0 : i32, i32
  }
  func.func @transform_4(%arg0: i32) -> (i32, i32) {
    %c0_i32 = arith.constant 0 : i32
    %c0_i32_0 = arith.constant 0 : i32
    %c0_i32_1 = arith.constant 0 : i32
    return %c0_i32, %c0_i32_0 : i32, i32
  }
  func.func @transform_5(%arg0: i32) -> (i32, i32, i32) {
    %c0_i32 = arith.constant 0 : i32
    %c0_i32_0 = arith.constant 0 : i32
    %c0_i32_1 = arith.constant 0 : i32
    %c0_i32_2 = arith.constant 0 : i32
    return %c0_i32, %c0_i32_0, %c0_i32_1 : i32, i32, i32
  }
  func.func @transform_6(%arg0: i32) -> (i32, i32, i32) {
    %c0_i32 = arith.constant 0 : i32
    %c0_i32_0 = arith.constant 0 : i32
    %c0_i32_1 = arith.constant 0 : i32
    %c0_i32_2 = arith.constant 0 : i32
    return %c0_i32, %c0_i32_0, %c0_i32_1 : i32, i32, i32
  }
  func.func @transform_7(%arg0: i32) -> (i32, i32) {
    %c0_i32 = arith.constant 0 : i32
    %c0_i32_0 = arith.constant 0 : i32
    %c0_i32_1 = arith.constant 0 : i32
    return %c0_i32, %c0_i32_0 : i32, i32
  }
  func.func @transform_8(%arg0: i32) -> (i32, i32) {
    %c0_i32 = arith.constant 0 : i32
    %c0_i32_0 = arith.constant 0 : i32
    %c0_i32_1 = arith.constant 0 : i32
    return %c0_i32, %c0_i32_0 : i32, i32
  }
  func.func @transform_9(%arg0: i32) -> (i32, i32, i32) {
    %c0_i32 = arith.constant 0 : i32
    %c0_i32_0 = arith.constant 0 : i32
    %c0_i32_1 = arith.constant 0 : i32
    return %arg0, %c0_i32, %c0_i32_0 : i32, i32, i32
  }
}

</mosaic_0001>

<bundles_post_ra>
// kernel: forward.1
= control target key start
LH: loop header
LB: loop body
LE: loop exit
PB: predicated region body
PF: predicated region fallthrough
CT: control target
= control target key end

     0   :  { %14 = vsyncpa [#allocation3], 0  ;;  %s1132_s30 = smov 0   ;;  %s1295_s0 = inlined_call_operand.vmem [shape: f32[4], index: 0, kind: input, shape index: {}]   ;;  %s1296_s1 = inlined_call_operand.vmem [shape: f32[8,16,128], index: 1, kind: input, shape index: {}]   ;;  %s1297_s2 = inlined_call_operand.vmem [shape: bf16[128,128], index: 2, kind: input, shape index: {}]   ;;  %s1298_s3 = inlined_call_operand.vmem [shape: f32[1,128], index: 3, kind: input, shape index: {}]   ;;  %s1299_s4 = inlined_call_operand.vmem [shape: bf16[16,16], index: 4, kind: input, shape index: {}]   ;;  %s1300_s5 = inlined_call_operand.vmem [shape: bf16[1,128,128], index: 5, kind: input, shape index: {}]   ;;  %s1301_s6 = inlined_call_operand.vmem [shape: f32[1,1,128], index: 6, kind: input, shape index: {}]   ;;  %s1302_s7 = inlined_call_operand.vmem [shape: bf16[128,128], index: 7, kind: input, shape index: {}]   ;;  %s1303_s8 = inlined_call_operand.vmem [shape: f32[1,128], index: 8, kind: input, shape index: {}]   ;;  %s1304_s9 = inlined_call_operand.vmem [shape: f32[8,16,128], index: 9, kind: output, shape index: {}]  }
   0x1 LB: > { %s1138_s10 = sadd.s32 4294967295, %s1077_s30   ;;  %p859_p0 = scmp.ge.s32.totalorder %s1077_s30, 1  ;;  %s1077_s30 = sphi %s1132_s30, %s20_s30  }
   0x2   : > { %p245_p1 = scmp.lt.s32.totalorder %s1077_s30, 9  ;;  %s258_s13 = sshll.u32 %s1295_s0, 4  ;;  %s259_s13 = int_to_ptr.vmem [resolvable:$true] %s258_s13 }
   0x3   : > { %p1006_p3 = scmp.eq.s32.totalorder %s1138_s10, 0  ;;  %s1052_s15 = scalar_lea.vmem %s259_s13, 16 }
   0x4   : > { %p1145_p2 = pnand %p859_p0, %p245_p1  ;;  %p1053_p6 = scmp.ne.s32.totalorder %s259_s13, %s1052_s15 }
   0x5   : > { %p1060_p10 = scmp.lt.s32.totalorder %s259_s13, %s259_s13  ;;  %p1061_p11 = scmp.lt.s32.totalorder %s1052_s15, %s1052_s15 }
   0x6   : > { %p1002_p4 = pneg %p1145_p2 }
   0x7   : > { %p1062_p12 = por %p1061_p11, %p1060_p10 }
   0x8   : > { %p1003_p5 = pnand %p1006_p3, %p1002_p4 }
   0xa   : > { %p1054_p7 = pneg %p1003_p5 }
   0xc   : > { %p1055_p8 = pnand %p1054_p7, %p1053_p6 }
   0xe   : > { %p1056_p9 = pneg %p1055_p8 }
  0x10   : > { %p1063_p13 = pnand %p1062_p12, %p1056_p9 }
  0x12   : > { %1066 = shalt.err (!%p1063_p13)
}
  0x13   : > { %s1079_s16 = smov [#allocation2]   ;;  %300 = sbr.rel (%p1145_p2) target bundleno = 1200 (0x4b0), region = 56 }
  0x14   : > { %1005 = dma.vmem_to_smem (!%p1003_p5), %s259_s13, 16, %s1079_s16, [#allocation3]  }
  0x18   : > { %1072 = dma.done.wait (%p1006_p3), [#allocation3], 16  }
  0x19   : > { %1074 = vsyncadd (%p1006_p3), [#allocation3], 4294967280 }
  0x1a   : > { %306 = sfence }
  0x1b   : > { %v1019_v0 = vld [vmem:[%s1297_s2 + $0x38] sm:$0xff]   ;;  %v1080_v1 = vmov 0.0   ;;  %v1020_v2 = vld [vmem:[%s1297_s2 + $0x30] sm:$0xff]   ;;  %vm1081_vm0 = vmmov 0   ;;  %p337_p0 = scmp.lt.s32.totalorder %s1138_s10, 7  ;;  %v1021_v3 = vld [vmem:[%s1297_s2 + $0x28] sm:$0xff]  }
  0x1c   : > { %932 = vmatprep.subr.bf16.mxu0 %v1080_v1  ;;  %952 = vmatprep.subr.bf16.mxu1 %v1080_v1  ;;  %v1022_v4 = vld [vmem:[%s1297_s2 + $0x20] sm:$0xff]   ;;  %v1027_v5 = vld [vmem:[%s1300_s5 + $0x38] sm:$0xff]   ;;  %v1024_v7 = vld [vmem:[%s1297_s2 + $0x10] sm:$0xff]   ;;  %s472_s18 = sld [smem:[#allocation2]]  ;;  %vm606_vm1 = vcmask 130048  }
  0x1d   : > { %933 = vmatpush3.bf16.msra.mxu0 %v1019_v0  ;;  %948 = vmatprep.mubr.msk.bf16.mxu0 %vm1081_vm0, %v1080_v1  ;;  %s1307_s10 = smov (!%p337_p0, %s1138_s10), 7  ;;  %v1023_v6 = vld [vmem:[%s1297_s2 + $0x18] sm:$0xff]   ;;  %v1025_v8 = vld [vmem:[%s1297_s2 + $0x8] sm:$0xff]   ;;  %v1026_v9 = vld [vmem:[%s1297_s2] sm:$0xff]   ;;  %s877_s19 = sld [smem:[#allocation2 + $0x1]] }
  0x1e   : > { %934 = vmatprep.subr.bf16.mxu0 %v1080_v1  ;;  %968 = vmatprep.mubr.msk.bf16.mxu1 %vm1081_vm0, %v1080_v1  ;;  %s901_s12 = sshll.u32 %s1307_s10, 4  ;;  %v1028_v13 = vld [vmem:[%s1300_s5 + $0x30] sm:$0xff]   ;;  %v1029_v14 = vld [vmem:[%s1300_s5 + $0x28] sm:$0xff]   ;;  %v1030_v15 = vld [vmem:[%s1300_s5 + $0x20] sm:$0xff]   ;;  %s889_s22 = sld [smem:[#allocation2 + $0x3]] }
  0x1f   : > { %953 = vmatpush3.bf16.msra.mxu1 %v1027_v5  ;;  %s341_s17 = scalar_lea.vmem %s1296_s1, %s901_s12  ;;  %v1031_v16 = vld [vmem:[%s1300_s5 + $0x18] sm:$0xff]   ;;  %v1032_v17 = vld [vmem:[%s1300_s5 + $0x10] sm:$0xff]   ;;  %v1033_v18 = vld [vmem:[%s1300_s5 + $0x8] sm:$0xff]   ;;  %s346_s27 = scalar_lea.vmem %s1304_s9, %s901_s12 }
  0x20   : > { %954 = vmatprep.subr.bf16.mxu1 %v1080_v1  ;;  %v348_v10 = vld [vmem:[%s341_s17] sm:$0xff]  ;;  %v349_v11 = vld [vmem:[%s341_s17 + $0x8] sm:$0xff]  ;;  %v1036_v45 = vld [vmem:[%s1302_s7 + $0x38] sm:$0xff]  }
  0x21   : > { %935 = vmatpush3.bf16.msra.mxu0 %v1020_v2  ;;  %v366_v12 = vpack.c.bf16 %v349_v11, %v348_v10  ;;  %v1034_v19 = vld [vmem:[%s1300_s5] sm:$0xff]   ;;  %v1037_v46 = vld [vmem:[%s1302_s7 + $0x30] sm:$0xff]   ;;  %v1038_v47 = vld [vmem:[%s1302_s7 + $0x28] sm:$0xff]  }
  0x22   : > { %936 = vmatprep.subr.bf16.mxu0 %v1080_v1  ;;  %v868_v21 = vld [vmem:[%s1298_s3] ss:$0 sm:$0xff]  ;;  %v473_v32 = vstv %s472_s18  ;;  %v1040_v49 = vld [vmem:[%s1302_s7 + $0x18] sm:$0xff]   ;;  %v1041_v50 = vld [vmem:[%s1302_s7 + $0x10] sm:$0xff]  }
  0x23   : > { %955 = vmatpush3.bf16.msra.mxu1 %v1028_v13  ;;  %v479_v37 = vstv %s877_s19  ;;  %v1039_v48 = vld [vmem:[%s1302_s7 + $0x20] sm:$0xff]   ;;  %v1042_v62 = vld [vmem:[%s1302_s7 + $0x8] sm:$0xff]  }
  0x24   : > { %956 = vmatprep.subr.bf16.mxu1 %v1080_v1  ;;  %v878_v51 = vld [vmem:[%s1301_s6] ss:$0 sm:$0xff]  ;;  %v652_v2 = vstv %s889_s22 }
  0x25   : > { %937 = vmatpush3.bf16.msra.mxu0 %v1021_v3  ;;  %v1035_v61 = vld [vmem:[%s1299_s4] sm:$0xff]  }
  0x26   : > { %938 = vmatprep.subr.bf16.mxu0 %v1080_v1  ;;  %v1043_v63 = vld [vmem:[%s1302_s7] sm:$0xff]  }
  0x27   : > { %957 = vmatpush3.bf16.msra.mxu1 %v1029_v14 }
  0x28   : > { %958 = vmatprep.subr.bf16.mxu1 %v1080_v1 }
  0x29   : > { %939 = vmatpush3.bf16.msra.mxu0 %v1022_v4 }
  0x2a   : > { %940 = vmatprep.subr.bf16.mxu0 %v1080_v1 }
  0x2b   : > { %959 = vmatpush3.bf16.msra.mxu1 %v1030_v15 }
  0x2c   : > { %960 = vmatprep.subr.bf16.mxu1 %v1080_v1 }
  0x2d   : > { %941 = vmatpush3.bf16.msra.mxu0 %v1023_v6 }
  0x2e   : > { %942 = vmatprep.subr.bf16.mxu0 %v1080_v1 }
  0x2f   : > { %961 = vmatpush3.bf16.msra.mxu1 %v1031_v16 }
  0x30   : > { %962 = vmatprep.subr.bf16.mxu1 %v1080_v1 }
  0x31   : > { %943 = vmatpush3.bf16.msra.mxu0 %v1024_v7 }
  0x32   : > { %944 = vmatprep.subr.bf16.mxu0 %v1080_v1 }
  0x33   : > { %963 = vmatpush3.bf16.msra.mxu1 %v1032_v17 }
  0x34   : > { %964 = vmatprep.subr.bf16.mxu1 %v1080_v1 }
  0x35   : > { %945 = vmatpush3.bf16.msra.mxu0 %v1025_v8 }
  0x36   : > { %946 = vmatprep.subr.bf16.mxu0 %v1080_v1 }
  0x37   : > { %965 = vmatpush3.bf16.msra.mxu1 %v1033_v18 }
  0x38   : > { %966 = vmatprep.subr.bf16.mxu1 %v1080_v1 }
  0x39   : > { %947 = vmatpush3.bf16.msra.mxu0 %v1026_v9  ;;  %v890_v9 = vld [vmem:[%s1303_s8] ss:$0 sm:$0xff] }
  0x3a   : > { %972 = vmatprep.subr.bf16.mxu0 %v1080_v1 }
  0x3b   : > { %967 = vmatpush3.bf16.msra.mxu1 %v1034_v19 }
  0x3c   : > { %949 = vmatmul.mubr.bf16.vlgmr.msra.gmra.mxu0 %v366_v12  ;;  %978 = vmatprep.subr.bf16.mxu1 %v1080_v1 }
  0x3d   : > { %974 = vmatprep.mubr.msk.bf16.mxu0 %vm1081_vm0, %v1080_v1 }
  0xfc   : > { %v456_v20 = vpop.f32.mrf.mxu0 }
  0xfd   : > { %v457_v24 = vadd.f32 %v868_v21, %v456_v20 }
  0xfe   : > { %v950_v22 = vpop.f32.mrf.mxu0 }
  0xff   : > { %v474_v34 = vmul.f32 %v473_v32, %v457_v24 }
 0x100   : > { %v459_v23 = vpop.f32.mrf.mxu0 }
 0x101   : > { %v460_v25 = vadd.f32 %v868_v21, %v459_v23  ;;  %v476_v39 = vadd.f32 %v474_v34, %v474_v34 }
 0x102   : > { %v951_v26 = vpop.f32.mrf.mxu0 }
 0x103   : > { %v463_v27 = vadd.f32 %v460_v25, %v457_v24  ;;  %v475_v36 = vmul.f32 %v473_v32, %v460_v25 }
 0x105   : > { %v464_v28 = vrot.slane %v463_v27, 4  ;;  %v477_v40 = vadd.f32 %v475_v36, %v475_v36 }
 0x107   : > { %v465_v29 = vadd.f32 %v464_v28, %v463_v27 }
 0x109   : > { %v466_v30 = vrot.slane %v465_v29, 2 }
 0x10b   : > { %v467_v31 = vadd.f32 %v466_v30, %v465_v29 }
 0x10d   : > { %v468_v33 = vrot.slane %v467_v31, 1 }
 0x10f   : > { %v469_v35 = vadd.f32 %v468_v33, %v467_v31 }
 0x111   : > { %v471_v38 = vmul.f32 0.0625, %v469_v35 }
 0x113   : > { %v480_v41 = vmul.f32 %v479_v37, %v471_v38 }
 0x115   : > { %v482_v42 = vadd.f32 %v480_v41, %v477_v40  ;;  %v481_v43 = vadd.f32 %v480_v41, %v476_v39 }
 0x117   : > { %v499_v44 = vpack.c.bf16 %v482_v42, %v481_v43 }
 0x119   : > { %969 = vmatmul.mubr.bf16.vlgmr.msra.gmra.mxu1 %v499_v44 }
 0x11a   : > { %994 = vmatprep.mubr.msk.bf16.mxu1 %vm1081_vm0, %v1080_v1  ;;  %979 = vmatpush3.bf16.msra.mxu1 %v1036_v45 }
 0x11b   : > { %980 = vmatprep.subr.bf16.mxu1 %v1080_v1 }
 0x11e   : > { %981 = vmatpush3.bf16.msra.mxu1 %v1037_v46 }
 0x11f   : > { %982 = vmatprep.subr.bf16.mxu1 %v1080_v1 }
 0x122   : > { %983 = vmatpush3.bf16.msra.mxu1 %v1038_v47 }
 0x123   : > { %984 = vmatprep.subr.bf16.mxu1 %v1080_v1 }
 0x126   : > { %985 = vmatpush3.bf16.msra.mxu1 %v1039_v48 }
 0x127   : > { %986 = vmatprep.subr.bf16.mxu1 %v1080_v1 }
 0x12a   : > { %987 = vmatpush3.bf16.msra.mxu1 %v1040_v49 }
 0x12b   : > { %988 = vmatprep.subr.bf16.mxu1 %v1080_v1 }
 0x12e   : > { %989 = vmatpush3.bf16.msra.mxu1 %v1041_v50 }
 0x12f   : > { %990 = vmatprep.subr.bf16.mxu1 %v1080_v1 }
 0x132   : > { %991 = vmatpush3.bf16.msra.mxu1 %v1042_v62 }
 0x133   : > { %992 = vmatprep.subr.bf16.mxu1 %v1080_v1 }
 0x136   : > { %993 = vmatpush3.bf16.msra.mxu1 %v1043_v63 }
 0x1d9   : > { %v589_v52 = vpop.f32.mrf.mxu1 }
 0x1da   : > { %v590_v54 = vadd.f32 %v878_v51, %v589_v52 }
 0x1db   : > { %v970_v53 = vpop.f32.mrf.mxu1 }
 0x1dc   : > { %v596_v58 = vmax.f32 %v590_v54, 0.0 }
 0x1dd   : > { %v592_v55 = vpop.f32.mrf.mxu1 }
 0x1de   : > { %v593_v56 = vadd.f32 %v878_v51, %v592_v55 }
 0x1df   : > { %v971_v57 = vpop.f32.mrf.mxu1 }
 0x1e0   : > { %v597_v59 = vmax.f32 %v593_v56, 0.0 }
 0x1e2   : > { %v600_v60 = vpack.c.bf16 %v597_v59, %v596_v58 }
 0x1e4   : > { %973 = vmatpush3.bf16.msra.mxu0 %v600_v60 }
 0x1e7   : > { %975 = vmatmul.mubr.msk.bf16.vlgmr.msra.gmra.mxu0 %vm606_vm1, %v1035_v61 }
 0x2a7   : > { %v644_v0 = vpop.f32.mrf.mxu0 }
 0x2a8   : > { %v653_v5 = vmul.f32 %v652_v2, %v644_v0 }
 0x2a9   : > { %v976_v3 = vpop.f32.mrf.mxu0 }
 0x2ab   : > { %v647_v4 = vpop.f32.mrf.mxu0 }
 0x2ac   : > { %v654_v6 = vmul.f32 %v652_v2, %v647_v4 }
 0x2ad   : > { %v977_v7 = vpop.f32.mrf.mxu0 }
 0x2ae   : > { %v671_v8 = vpack.c.bf16 %v654_v6, %v653_v5 }
 0x2b0   : > { %995 = vmatmul.mubr.bf16.vlgmr.msra.gmra.mxu1 %v671_v8 }
 0x370   : > { %v761_v1 = vpop.f32.mrf.mxu1 }
 0x371   : > { %v762_v10 = vadd.f32 %v890_v9, %v761_v1 }
 0x372   : > { %v996_v11 = vpop.f32.mrf.mxu1 }
 0x373   : > { %768 = vmax.xlane.f32.xlu0 %v762_v10 }
 0x374   : > { %v764_v12 = vpop.f32.mrf.mxu1 }
 0x375   : > { %v765_v13 = vadd.f32 %v890_v9, %v764_v12 }
 0x376   : > { %v997_v14 = vpop.f32.mrf.mxu1 }
 0x377   : > { %770 = vmax.xlane.f32.xlu0 %v765_v13 }
 0x3fc   : > { %v769_v15 = vpop.xlane.xlu0 %768 }
 0x3fd   : > { %v772_v16 = vsub.f32 %v762_v10, %v769_v15 }
 0x3ff   : > { %v774_v17 = vmul.f32 1.442695, %v772_v16 }
 0x400   : > { %v771_v18 = vpop.xlane.xlu0 %770 }
 0x401   : > { %v773_v19 = vsub.f32 %v765_v13, %v771_v18  ;;  %1044 = vpow2.f32 %v774_v17 }
 0x403   : > { %v776_v20 = vmul.f32 1.442695, %v773_v19 }
 0x405   : > { %1046 = vpow2.f32 %v776_v20 }
 0x40e   : > { %v1045_v21 = vpop.eup %1044 }
 0x40f   : > { %778 = vadd.xlane.f32.xlu1 %v1045_v21 }
 0x412   : > { %v1047_v22 = vpop.eup %1046 }
 0x413   : > { %780 = vadd.xlane.f32.xlu1 %v1047_v22 }
 0x498   : > { %v779_v23 = vpop.xlane.xlu1 %778 }
 0x499   : > { %1048 = vlog2.f32 %v779_v23 }
 0x49c   : > { %v781_v24 = vpop.xlane.xlu1 %780 }
 0x49d   : > { %1050 = vlog2.f32 %v781_v24 }
 0x4a6   : > { %v1049_v25 = vpop.eup %1048 }
 0x4a7   : > { %v783_v26 = vmul.f32 0.6931472, %v1049_v25 }
 0x4a9   : > { %v786_v27 = vsub.f32 %v772_v16, %v783_v26 }
 0x4aa   : > { %v1051_v28 = vpop.eup %1050 }
 0x4ab   : > { %788 = vst [vmem:[%s346_s27] sm:$0xff] %v786_v27  ;;  %v785_v29 = vmul.f32 0.6931472, %v1051_v28 }
 0x4ad   : > { %v787_v30 = vsub.f32 %v773_v19, %v785_v29 }
 0x4af   : > { %789 = vst [vmem:[%s346_s27 + $0x8] sm:$0xff] %v787_v30 }
 0x4b0 PF: > { %s20_s30 = sadd.s32 1, %s1077_s30  }
 0x4b1   : > { %p17_p1 = scmp.ge.s32.totalorder %s20_s30, 10  }
 0x4b3   :  { %19 = sbr.rel (!%p17_p1) target bundleno = 1 (0x1), region = 91 }
 0x4b8   :  { %811 = vsyncpa [#allocation3], 1 }
 0x4b9   :  { %813 = vsyncpa [#allocation3 + $0x1], 1 }

</bundles_post_ra>
